<compile_context>
chip_gen: v6e
topology: v6e:2x2x1
jax: 0.10.0
libtpu: 0.0.40
codegen_flags: <defaults>
</compile_context>

<pallas_src>
import jax
import jax.numpy as jnp
from jax import lax
from jax.experimental import pallas as pl
from jax.experimental.pallas import tpu as pltpu


def _make_fm_kernel(sb, n_strips):
    """Build the FM kernel for a given sub-strip width sb and strip count."""

    def fm_kernel(idx_ref, val_ref, wcat_ref, bias_ref, out_ref):
        # idx_ref:  [F, TB]     int32 feature indices (batch on lanes)
        # val_ref:  [F, TB]     feature values (batch on lanes)
        # wcat_ref: [E+2, 2V]   block-diag table:
        #                         rows 0..E-1 : [interaction_weight.T , 0]
        #                         row  E      : [feature_weight.T     , 0]
        #                         row  E+1    : [0 , sum_e interaction_weight^2]
        # bias_ref: [1]         scalar bias (SMEM)
        # out_ref:  [1, TB]     lane-dense output row
        F = idx_ref.shape[0]
        Ep2, V2 = wcat_ref.shape
        E = Ep2 - 2
        V = V2 // 2

        # Grid-/strip-invariant loads, hoisted once (JAX does not CSE broadcasts).
        wcat = wcat_ref[...].astype(jnp.float32)                     # [E+2, 2V]
        bias = bias_ref[0]
        v_iota = lax.broadcasted_iota(jnp.int32, (V, sb), 0)         # vocab id / sublane

        def strip_body(s, carry):
            start = pl.multiple_of(s * sb, sb)
            idx = idx_ref[:, pl.ds(start, sb)]                       # [F, sb] int32
            val = val_ref[:, pl.ds(start, sb)].astype(jnp.float32)   # [F, sb]
            val2 = val * val                                         # precomputed squares

            # Value-weighted one-hot "scatter" over the vocabulary (fused gather).
            acc1 = jnp.zeros((V, sb), jnp.float32)
            acc2 = jnp.zeros((V, sb), jnp.float32)
            for f in range(F):                                       # F small & static
                eq = v_iota == idx[f:f + 1, :]                       # [V, sb] bool
                acc1 = acc1 + jnp.where(eq, val[f:f + 1, :], 0.0)
                acc2 = acc2 + jnp.where(eq, val2[f:f + 1, :], 0.0)

            # Single fused MXU matmul: [E+2, 2V] @ [2V, sb].
            acc = jnp.concatenate([acc1, acc2], axis=0)              # [2V, sb]
            res = jnp.dot(wcat, acc, preferred_element_type=jnp.float32,
                          precision=lax.Precision.HIGHEST)           # [E+2, sb]

            sums = res[:E, :]                # sum_f v_f * W[idx_f]          -> [E, sb]
            first = res[E:E + 1, :]          # first-order term              -> [1, sb]
            sq_then_sum = res[E + 1:E + 2, :]  # sum_e sum_f (v_f W[idx_f])^2 -> [1, sb]

            sum_then_sq = jnp.sum(sums * sums, axis=0, keepdims=True)  # [1, sb]
            second = 0.5 * (sum_then_sq - sq_then_sum)                 # [1, sb]

            out_ref[:, pl.ds(start, sb)] = (first + second + bias).astype(out_ref.dtype)
            return carry

        lax.fori_loop(0, n_strips, strip_body, 0)

    return fm_kernel


def _round128(x):
    return ((int(x) + 127) // 128) * 128


def fm_forward(feature_index, feature_value, feature_weight, interaction_weight,
               bias, *, tb=1024):
    """FM_2D_Layer.forward equivalent. Returns [B, 1] float32.

    tb = requested batch tile (lane width per grid step).  The effective tile is
    rounded to a multiple of 128, and shrunk so the grid has >= 2 tiles whenever
    B > 128 (keeps both v7x TensorCores busy).  Large tiles are safe because the
    kernel strip-mines the accumulation in 128/256-lane sub-strips.
    """
    B, F = feature_value.shape
    V, E = interaction_weight.shape

    # --- Resolve batch tile / strip sizes -----------------------------------
    tb_eff = max(128, _round128(tb))
    if B > 128:
        # Ensure >= 2 grid tiles so the "parallel" axis shards across v7x cores.
        tb_eff = min(tb_eff, _round128(pl.cdiv(B, 2)))
    else:
        tb_eff = 128
    sb = 256 if tb_eff % 256 == 0 else 128        # sub-strip width (vreg-safe)
    n_strips = tb_eff // sb
    n_tiles = pl.cdiv(B, tb_eff)
    b_pad = n_tiles * tb_eff
    pad = b_pad - B

    # --- Layout plumbing in the wrapper (tiny tensors) ----------------------
    # Pad + transpose so batch sits on the lane axis.
    idx_t = jnp.pad(feature_index.astype(jnp.int32), ((0, pad), (0, 0))).T   # [F, B_pad]
    val_t = jnp.pad(feature_value, ((0, pad), (0, 0))).T                     # [F, B_pad]

    # Block-diagonal fused weight table [E+2, 2V] (all grid-invariant math here).
    wT = interaction_weight.T.astype(jnp.float32)                            # [E, V]
    w1 = feature_weight.T.astype(jnp.float32)                                # [1, V]
    w2row = jnp.sum(interaction_weight.astype(jnp.float32) ** 2,
                    axis=1)[None, :]                                         # [1, V]
    top = jnp.concatenate([wT, w1], axis=0)                                  # [E+1, V]
    wcat = jnp.concatenate(
        [jnp.concatenate([top, jnp.zeros_like(top)], axis=1),                # [E+1, 2V]
         jnp.concatenate([jnp.zeros((1, V), jnp.float32), w2row], axis=1)],  # [1,   2V]
        axis=0)                                                              # [E+2, 2V]
    bias_s = bias.reshape(1).astype(jnp.float32)                             # [1] -> SMEM

    kernel = _make_fm_kernel(sb, n_strips)

    out_row = pl.pallas_call(
        kernel,
        out_shape=jax.ShapeDtypeStruct((1, b_pad), jnp.float32),
        grid=(n_tiles,),
        in_specs=[
            pl.BlockSpec((F, tb_eff), lambda i: (0, i)),        # indices   [F, TB]
            pl.BlockSpec((F, tb_eff), lambda i: (0, i)),        # values    [F, TB]
            pl.BlockSpec((E + 2, 2 * V), lambda i: (0, 0)),     # fused weight table
            pl.BlockSpec(memory_space=pltpu.MemorySpace.SMEM),  # bias scalar
        ],
        out_specs=pl.BlockSpec((1, tb_eff), lambda i: (0, i)),  # lane-dense output row
        compiler_params=pltpu.CompilerParams(
            dimension_semantics=("parallel",),                  # v7x: shard batch over TCs
        ),
    )(idx_t, val_t, wcat, bias_s)

    return out_row[0, :B].reshape(B, 1)


def fm_reference(feature_index, feature_value, feature_weight, interaction_weight, bias):
    """Pure-JAX reference mirroring the PyTorch forward exactly."""
    fv = feature_value[:, :, None]                             # [B, F, 1]
    fw = feature_weight[feature_index]                         # [B, F, 1]
    first = jnp.sum(jnp.squeeze(fv * fw, 2), axis=1)           # [B]
    iw = interaction_weight[feature_index]                     # [B, F, E]
    fve = iw * fv                                              # [B, F, E]
    int_sum_square = jnp.sum(fve, axis=1) ** 2                 # [B, E]
    int_square_sum = jnp.sum(fve ** 2, axis=1)                 # [B, E]
    second = jnp.sum(0.5 * (int_sum_square - int_square_sum), axis=1)
    return (first + second + bias)[:, None]


def xavier_normal(key, shape):
    fan_in, fan_out = shape[0], shape[1]
    std = (2.0 / (fan_in + fan_out)) ** 0.5
    return std * jax.random.normal(key, shape, dtype=jnp.float32)


if __name__ == "__main__":
    # Module hyperparameters (small, consistent with FM_2D_Layer __init__).
    n_feature = 32
    n_field = 8
    embedding_dim = 16

    key = jax.random.PRNGKey(0)
    k_fw, k_iw, k_b, k_data = jax.random.split(key, 4)

    feature_weight = xavier_normal(k_fw, (n_feature, 1))                  # [V, 1]
    interaction_weight = xavier_normal(k_iw, (n_feature, embedding_dim))  # [V, E]
    bias = jax.random.normal(k_b, (1,), dtype=jnp.float32)                # [1]

    fm_fwd = jax.jit(fm_forward, static_argnames=("tb",))

    # Case 1: batch smaller than one tile (zero-padding path, single tile).
    # Case 2: small explicit tile -> several pipelined grid steps.
    # Case 3: default tb -> tile auto-shrunk so the grid has >= 2 tiles (v7x path),
    #         with 256-lane strip-mining inside the kernel.
    for batch, tb in ((64, 512), (384, 128), (384, 1024)):
        k_idx, k_val = jax.random.split(jax.random.fold_in(k_data, batch))
        feature_index = jax.random.randint(k_idx, (batch, n_field), 0, n_feature,
                                           dtype=jnp.int32)
        feature_value = jax.random.normal(k_val, (batch, n_field), dtype=jnp.float32)

        out = jax.block_until_ready(
            fm_fwd(feature_index, feature_value, feature_weight,
                   interaction_weight, bias, tb=tb))
        ref = fm_reference(feature_index, feature_value, feature_weight,
                           interaction_weight, bias)
        assert out.shape == (batch, 1)
        assert jnp.allclose(out, ref, atol=1e-3, rtol=1e-3), (out, ref)

    print("KERNEL_OK")
</pallas_src>

<mosaic_0001>
module attributes {stable_mosaic.version = 11 : i64} {
  func.func @fm_kernel(%arg0: i32, %arg1: memref<8x128xi32, #tpu.memory_space<vmem>>, %arg2: memref<8x128xf32, #tpu.memory_space<vmem>>, %arg3: memref<18x64xf32, #tpu.memory_space<vmem>>, %arg4: memref<1xf32, #tpu.memory_space<smem>>, %arg5: memref<1x128xf32, #tpu.memory_space<vmem>>) attributes {dimension_semantics = [#tpu.dimension_semantics<parallel>], iteration_bounds = array<i64: 1>, scalar_prefetch = 0 : i64, scratch_operands = 0 : i64, tpu.core_type = #tpu.core_type<tc>, window_params = [{transform_indices = @transform_0, window_bounds = array<i64: 8, 128>}, {transform_indices = @transform_1, window_bounds = array<i64: 8, 128>}, {pipeline_mode = #tpu.pipeline_mode<synchronous>, transform_indices = @transform_2, window_bounds = array<i64: 18, 64>}, {transform_indices = @transform_3, window_bounds = array<i64: 1>}, {transform_indices = @transform_4, window_bounds = array<i64: 1, 128>}]} {
    %c0 = arith.constant 0 : index
    %c0_0 = arith.constant 0 : index
    %0 = vector.load %arg3[%c0, %c0_0] : memref<18x64xf32, #tpu.memory_space<vmem>>, vector<18x64xf32>
    %c0_1 = arith.constant 0 : index
    %1 = memref.load %arg4[%c0_1] : memref<1xf32, #tpu.memory_space<smem>>
    %2 = tpu.iota {dimensions = array<i32: 0>} : vector<32x128xi32>
    %c0_i32 = arith.constant 0 : i32
    %c128_i32 = arith.constant 128 : i32
    %3 = arith.muli %c0_i32, %c128_i32 : i32
    %4 = tpu.assume_multiple %3, 128 : i32
    %c0_2 = arith.constant 0 : index
    %5 = arith.index_cast %4 : i32 to index
    %6 = vector.load %arg1[%c0_2, %5] : memref<8x128xi32, #tpu.memory_space<vmem>>, vector<8x128xi32>
    %c0_3 = arith.constant 0 : index
    %7 = arith.index_cast %4 : i32 to index
    %8 = vector.load %arg2[%c0_3, %7] : memref<8x128xf32, #tpu.memory_space<vmem>>, vector<8x128xf32>
    %9 = arith.mulf %8, %8 : vector<8x128xf32>
    %cst = arith.constant 0.000000e+00 : f32
    %10 = vector.broadcast %cst : f32 to vector<32x128xf32>
    %cst_4 = arith.constant 0.000000e+00 : f32
    %11 = vector.broadcast %cst_4 : f32 to vector<32x128xf32>
    %12 = vector.extract_strided_slice %6 {offsets = [0, 0], sizes = [1, 128], strides = [1, 1]} : vector<8x128xi32> to vector<1x128xi32>
    %13 = vector.broadcast %12 : vector<1x128xi32> to vector<32x128xi32>
    %14 = arith.cmpi eq, %2, %13 : vector<32x128xi32>
    %15 = vector.extract_strided_slice %8 {offsets = [0, 0], sizes = [1, 128], strides = [1, 1]} : vector<8x128xf32> to vector<1x128xf32>
    %cst_5 = arith.constant 0.000000e+00 : f32
    %16 = vector.shape_cast %15 : vector<1x128xf32> to vector<1x128xf32>
    %17 = vector.broadcast %16 : vector<1x128xf32> to vector<32x128xf32>
    %18 = vector.broadcast %cst_5 : f32 to vector<32x128xf32>
    %19 = arith.select %14, %17, %18 : vector<32x128xi1>, vector<32x128xf32>
    %20 = arith.addf %10, %19 : vector<32x128xf32>
    %21 = vector.extract_strided_slice %9 {offsets = [0, 0], sizes = [1, 128], strides = [1, 1]} : vector<8x128xf32> to vector<1x128xf32>
    %cst_6 = arith.constant 0.000000e+00 : f32
    %22 = vector.shape_cast %21 : vector<1x128xf32> to vector<1x128xf32>
    %23 = vector.broadcast %22 : vector<1x128xf32> to vector<32x128xf32>
    %24 = vector.broadcast %cst_6 : f32 to vector<32x128xf32>
    %25 = arith.select %14, %23, %24 : vector<32x128xi1>, vector<32x128xf32>
    %26 = arith.addf %11, %25 : vector<32x128xf32>
    %27 = vector.extract_strided_slice %6 {offsets = [1, 0], sizes = [1, 128], strides = [1, 1]} : vector<8x128xi32> to vector<1x128xi32>
    %28 = vector.broadcast %27 : vector<1x128xi32> to vector<32x128xi32>
    %29 = arith.cmpi eq, %2, %28 : vector<32x128xi32>
    %30 = vector.extract_strided_slice %8 {offsets = [1, 0], sizes = [1, 128], strides = [1, 1]} : vector<8x128xf32> to vector<1x128xf32>
    %cst_7 = arith.constant 0.000000e+00 : f32
    %31 = vector.shape_cast %30 : vector<1x128xf32> to vector<1x128xf32>
    %32 = vector.broadcast %31 : vector<1x128xf32> to vector<32x128xf32>
    %33 = vector.broadcast %cst_7 : f32 to vector<32x128xf32>
    %34 = arith.select %29, %32, %33 : vector<32x128xi1>, vector<32x128xf32>
    %35 = arith.addf %20, %34 : vector<32x128xf32>
    %36 = vector.extract_strided_slice %9 {offsets = [1, 0], sizes = [1, 128], strides = [1, 1]} : vector<8x128xf32> to vector<1x128xf32>
    %cst_8 = arith.constant 0.000000e+00 : f32
    %37 = vector.shape_cast %36 : vector<1x128xf32> to vector<1x128xf32>
    %38 = vector.broadcast %37 : vector<1x128xf32> to vector<32x128xf32>
    %39 = vector.broadcast %cst_8 : f32 to vector<32x128xf32>
    %40 = arith.select %29, %38, %39 : vector<32x128xi1>, vector<32x128xf32>
    %41 = arith.addf %26, %40 : vector<32x128xf32>
    %42 = vector.extract_strided_slice %6 {offsets = [2, 0], sizes = [1, 128], strides = [1, 1]} : vector<8x128xi32> to vector<1x128xi32>
    %43 = vector.broadcast %42 : vector<1x128xi32> to vector<32x128xi32>
    %44 = arith.cmpi eq, %2, %43 : vector<32x128xi32>
    %45 = vector.extract_strided_slice %8 {offsets = [2, 0], sizes = [1, 128], strides = [1, 1]} : vector<8x128xf32> to vector<1x128xf32>
    %cst_9 = arith.constant 0.000000e+00 : f32
    %46 = vector.shape_cast %45 : vector<1x128xf32> to vector<1x128xf32>
    %47 = vector.broadcast %46 : vector<1x128xf32> to vector<32x128xf32>
    %48 = vector.broadcast %cst_9 : f32 to vector<32x128xf32>
    %49 = arith.select %44, %47, %48 : vector<32x128xi1>, vector<32x128xf32>
    %50 = arith.addf %35, %49 : vector<32x128xf32>
    %51 = vector.extract_strided_slice %9 {offsets = [2, 0], sizes = [1, 128], strides = [1, 1]} : vector<8x128xf32> to vector<1x128xf32>
    %cst_10 = arith.constant 0.000000e+00 : f32
    %52 = vector.shape_cast %51 : vector<1x128xf32> to vector<1x128xf32>
    %53 = vector.broadcast %52 : vector<1x128xf32> to vector<32x128xf32>
    %54 = vector.broadcast %cst_10 : f32 to vector<32x128xf32>
    %55 = arith.select %44, %53, %54 : vector<32x128xi1>, vector<32x128xf32>
    %56 = arith.addf %41, %55 : vector<32x128xf32>
    %57 = vector.extract_strided_slice %6 {offsets = [3, 0], sizes = [1, 128], strides = [1, 1]} : vector<8x128xi32> to vector<1x128xi32>
    %58 = vector.broadcast %57 : vector<1x128xi32> to vector<32x128xi32>
    %59 = arith.cmpi eq, %2, %58 : vector<32x128xi32>
    %60 = vector.extract_strided_slice %8 {offsets = [3, 0], sizes = [1, 128], strides = [1, 1]} : vector<8x128xf32> to vector<1x128xf32>
    %cst_11 = arith.constant 0.000000e+00 : f32
    %61 = vector.shape_cast %60 : vector<1x128xf32> to vector<1x128xf32>
    %62 = vector.broadcast %61 : vector<1x128xf32> to vector<32x128xf32>
    %63 = vector.broadcast %cst_11 : f32 to vector<32x128xf32>
    %64 = arith.select %59, %62, %63 : vector<32x128xi1>, vector<32x128xf32>
    %65 = arith.addf %50, %64 : vector<32x128xf32>
    %66 = vector.extract_strided_slice %9 {offsets = [3, 0], sizes = [1, 128], strides = [1, 1]} : vector<8x128xf32> to vector<1x128xf32>
    %cst_12 = arith.constant 0.000000e+00 : f32
    %67 = vector.shape_cast %66 : vector<1x128xf32> to vector<1x128xf32>
    %68 = vector.broadcast %67 : vector<1x128xf32> to vector<32x128xf32>
    %69 = vector.broadcast %cst_12 : f32 to vector<32x128xf32>
    %70 = arith.select %59, %68, %69 : vector<32x128xi1>, vector<32x128xf32>
    %71 = arith.addf %56, %70 : vector<32x128xf32>
    %72 = vector.extract_strided_slice %6 {offsets = [4, 0], sizes = [1, 128], strides = [1, 1]} : vector<8x128xi32> to vector<1x128xi32>
    %73 = vector.broadcast %72 : vector<1x128xi32> to vector<32x128xi32>
    %74 = arith.cmpi eq, %2, %73 : vector<32x128xi32>
    %75 = vector.extract_strided_slice %8 {offsets = [4, 0], sizes = [1, 128], strides = [1, 1]} : vector<8x128xf32> to vector<1x128xf32>
    %cst_13 = arith.constant 0.000000e+00 : f32
    %76 = vector.shape_cast %75 : vector<1x128xf32> to vector<1x128xf32>
    %77 = vector.broadcast %76 : vector<1x128xf32> to vector<32x128xf32>
    %78 = vector.broadcast %cst_13 : f32 to vector<32x128xf32>
    %79 = arith.select %74, %77, %78 : vector<32x128xi1>, vector<32x128xf32>
    %80 = arith.addf %65, %79 : vector<32x128xf32>
    %81 = vector.extract_strided_slice %9 {offsets = [4, 0], sizes = [1, 128], strides = [1, 1]} : vector<8x128xf32> to vector<1x128xf32>
    %cst_14 = arith.constant 0.000000e+00 : f32
    %82 = vector.shape_cast %81 : vector<1x128xf32> to vector<1x128xf32>
    %83 = vector.broadcast %82 : vector<1x128xf32> to vector<32x128xf32>
    %84 = vector.broadcast %cst_14 : f32 to vector<32x128xf32>
    %85 = arith.select %74, %83, %84 : vector<32x128xi1>, vector<32x128xf32>
    %86 = arith.addf %71, %85 : vector<32x128xf32>
    %87 = vector.extract_strided_slice %6 {offsets = [5, 0], sizes = [1, 128], strides = [1, 1]} : vector<8x128xi32> to vector<1x128xi32>
    %88 = vector.broadcast %87 : vector<1x128xi32> to vector<32x128xi32>
    %89 = arith.cmpi eq, %2, %88 : vector<32x128xi32>
    %90 = vector.extract_strided_slice %8 {offsets = [5, 0], sizes = [1, 128], strides = [1, 1]} : vector<8x128xf32> to vector<1x128xf32>
    %cst_15 = arith.constant 0.000000e+00 : f32
    %91 = vector.shape_cast %90 : vector<1x128xf32> to vector<1x128xf32>
    %92 = vector.broadcast %91 : vector<1x128xf32> to vector<32x128xf32>
    %93 = vector.broadcast %cst_15 : f32 to vector<32x128xf32>
    %94 = arith.select %89, %92, %93 : vector<32x128xi1>, vector<32x128xf32>
    %95 = arith.addf %80, %94 : vector<32x128xf32>
    %96 = vector.extract_strided_slice %9 {offsets = [5, 0], sizes = [1, 128], strides = [1, 1]} : vector<8x128xf32> to vector<1x128xf32>
    %cst_16 = arith.constant 0.000000e+00 : f32
    %97 = vector.shape_cast %96 : vector<1x128xf32> to vector<1x128xf32>
    %98 = vector.broadcast %97 : vector<1x128xf32> to vector<32x128xf32>
    %99 = vector.broadcast %cst_16 : f32 to vector<32x128xf32>
    %100 = arith.select %89, %98, %99 : vector<32x128xi1>, vector<32x128xf32>
    %101 = arith.addf %86, %100 : vector<32x128xf32>
    %102 = vector.extract_strided_slice %6 {offsets = [6, 0], sizes = [1, 128], strides = [1, 1]} : vector<8x128xi32> to vector<1x128xi32>
    %103 = vector.broadcast %102 : vector<1x128xi32> to vector<32x128xi32>
    %104 = arith.cmpi eq, %2, %103 : vector<32x128xi32>
    %105 = vector.extract_strided_slice %8 {offsets = [6, 0], sizes = [1, 128], strides = [1, 1]} : vector<8x128xf32> to vector<1x128xf32>
    %cst_17 = arith.constant 0.000000e+00 : f32
    %106 = vector.shape_cast %105 : vector<1x128xf32> to vector<1x128xf32>
    %107 = vector.broadcast %106 : vector<1x128xf32> to vector<32x128xf32>
    %108 = vector.broadcast %cst_17 : f32 to vector<32x128xf32>
    %109 = arith.select %104, %107, %108 : vector<32x128xi1>, vector<32x128xf32>
    %110 = arith.addf %95, %109 : vector<32x128xf32>
    %111 = vector.extract_strided_slice %9 {offsets = [6, 0], sizes = [1, 128], strides = [1, 1]} : vector<8x128xf32> to vector<1x128xf32>
    %cst_18 = arith.constant 0.000000e+00 : f32
    %112 = vector.shape_cast %111 : vector<1x128xf32> to vector<1x128xf32>
    %113 = vector.broadcast %112 : vector<1x128xf32> to vector<32x128xf32>
    %114 = vector.broadcast %cst_18 : f32 to vector<32x128xf32>
    %115 = arith.select %104, %113, %114 : vector<32x128xi1>, vector<32x128xf32>
    %116 = arith.addf %101, %115 : vector<32x128xf32>
    %117 = vector.extract_strided_slice %6 {offsets = [7, 0], sizes = [1, 128], strides = [1, 1]} : vector<8x128xi32> to vector<1x128xi32>
    %118 = vector.broadcast %117 : vector<1x128xi32> to vector<32x128xi32>
    %119 = arith.cmpi eq, %2, %118 : vector<32x128xi32>
    %120 = vector.extract_strided_slice %8 {offsets = [7, 0], sizes = [1, 128], strides = [1, 1]} : vector<8x128xf32> to vector<1x128xf32>
    %cst_19 = arith.constant 0.000000e+00 : f32
    %121 = vector.shape_cast %120 : vector<1x128xf32> to vector<1x128xf32>
    %122 = vector.broadcast %121 : vector<1x128xf32> to vector<32x128xf32>
    %123 = vector.broadcast %cst_19 : f32 to vector<32x128xf32>
    %124 = arith.select %119, %122, %123 : vector<32x128xi1>, vector<32x128xf32>
    %125 = arith.addf %110, %124 : vector<32x128xf32>
    %126 = vector.extract_strided_slice %9 {offsets = [7, 0], sizes = [1, 128], strides = [1, 1]} : vector<8x128xf32> to vector<1x128xf32>
    %cst_20 = arith.constant 0.000000e+00 : f32
    %127 = vector.shape_cast %126 : vector<1x128xf32> to vector<1x128xf32>
    %128 = vector.broadcast %127 : vector<1x128xf32> to vector<32x128xf32>
    %129 = vector.broadcast %cst_20 : f32 to vector<32x128xf32>
    %130 = arith.select %119, %128, %129 : vector<32x128xi1>, vector<32x128xf32>
    %131 = arith.addf %116, %130 : vector<32x128xf32>
    %132 = tpu.concatenate %125, %131 in 0 : vector<32x128xf32>, vector<32x128xf32> -> vector<64x128xf32>
    %cst_21 = arith.constant dense<0.000000e+00> : vector<18x128xf32>
    %133 = tpu.matmul %0, %132, %cst_21 {dimension_numbers = #tpu.dot_dimension_numbers<[1], [0], [0], [1], [0, 0, 1, 1], [], []>, precision = #tpu.contract_precision<fp32>} : vector<18x64xf32>, vector<64x128xf32>, vector<18x128xf32> -> vector<18x128xf32>
    %134 = vector.extract_strided_slice %133 {offsets = [0, 0], sizes = [16, 128], strides = [1, 1]} : vector<18x128xf32> to vector<16x128xf32>
    %135 = vector.extract_strided_slice %133 {offsets = [16, 0], sizes = [1, 128], strides = [1, 1]} : vector<18x128xf32> to vector<1x128xf32>
    %136 = vector.extract_strided_slice %133 {offsets = [17, 0], sizes = [1, 128], strides = [1, 1]} : vector<18x128xf32> to vector<1x128xf32>
    %137 = arith.mulf %134, %134 : vector<16x128xf32>
    %cst_22 = arith.constant dense<0.000000e+00> : vector<128xf32>
    %138 = vector.multi_reduction <add>, %137, %cst_22 [0] : vector<16x128xf32> to vector<128xf32>
    %139 = vector.shape_cast %138 : vector<128xf32> to vector<1x128xf32>
    %140 = arith.subf %139, %136 : vector<1x128xf32>
    %cst_23 = arith.constant 5.000000e-01 : f32
    %141 = vector.broadcast %cst_23 : f32 to vector<1x128xf32>
    %142 = arith.mulf %141, %140 : vector<1x128xf32>
    %143 = arith.addf %135, %142 : vector<1x128xf32>
    %144 = vector.broadcast %1 : f32 to vector<1x128xf32>
    %145 = arith.addf %143, %144 : vector<1x128xf32>
    %c0_24 = arith.constant 0 : index
    %146 = arith.index_cast %4 : i32 to index
    %147 = vector.load %arg5[%c0_24, %146] : memref<1x128xf32, #tpu.memory_space<vmem>>, vector<1x128xf32>
    tpu.vector_store %arg5[%c0_24, %146], %145 {strides = array<i32>} : memref<1x128xf32, #tpu.memory_space<vmem>>, vector<1x128xf32>,
    %c1_i32 = arith.constant 1 : i32
    return
  }
  func.func @transform_0(%arg0: i32) -> (i32, i32) {
    %c0_i32 = arith.constant 0 : i32
    %c0_i32_0 = arith.constant 0 : i32
    return %c0_i32, %arg0 : i32, i32
  }
  func.func @transform_1(%arg0: i32) -> (i32, i32) {
    %c0_i32 = arith.constant 0 : i32
    %c0_i32_0 = arith.constant 0 : i32
    return %c0_i32, %arg0 : i32, i32
  }
  func.func @transform_2(%arg0: i32) -> (i32, i32) {
    %c0_i32 = arith.constant 0 : i32
    %c0_i32_0 = arith.constant 0 : i32
    %c0_i32_1 = arith.constant 0 : i32
    return %c0_i32, %c0_i32_0 : i32, i32
  }
  func.func @transform_3(%arg0: i32) -> i32 {
    %c0_i32 = arith.constant 0 : i32
    %c0_i32_0 = arith.constant 0 : i32
    return %c0_i32 : i32
  }
  func.func @transform_4(%arg0: i32) -> (i32, i32) {
    %c0_i32 = arith.constant 0 : i32
    %c0_i32_0 = arith.constant 0 : i32
    return %c0_i32, %arg0 : i32, i32
  }
}

</mosaic_0001>

<bundles_post_ra>
// kernel: fm_forward.1
= control target key start
LH: loop header
LB: loop body
LE: loop exit
PB: predicated region body
PF: predicated region fallthrough
CT: control target
= control target key end

     0   :  { %v22_v0 = vlaneseq  ;;  %vm286_vm0 = vcmask 523264   ;;  %v1159_v1 = vmov 0.0   ;;  %vm1923_vm1 = vmmov 0   ;;  %s1918_s0 = inlined_call_operand.vmem [shape: s32[8,128], index: 0, kind: input, shape index: {}]   ;;  %s1919_s1 = inlined_call_operand.vmem [shape: f32[8,128], index: 1, kind: input, shape index: {}]   ;;  %s1920_s2 = inlined_call_operand.vmem [shape: f32[18,64], index: 2, kind: input, shape index: {}]   ;;  %s1921_s3 = inlined_call_operand.<no memory space> [shape: f32[1], index: 3, kind: input, shape index: {}]   ;;  %s1922_s4 = inlined_call_operand.vmem [shape: f32[1,128], index: 4, kind: output, shape index: {}]  }
   0x1   :  { %1007 = vmatprep.subr.mxu0 %v1159_v1  ;;  %v1190_v2 = vld [vmem:[%s1919_s1] sm:$0xff]  ;;  %1032 = vmatprep.subr.mxu1 %v1159_v1  ;;  %v19_v28 = vld [vmem:[%s1920_s2 + $0x8] sm:$0xff] }
   0x2   :  { %v18_v3 = vld [vmem:[%s1920_s2] sm:$0xff]  ;;  %v1196_v4 = vshrl.u32 %v22_v0, 7  ;;  %v29_v5 = vmul.f32 %v1190_v2, %v1190_v2  ;;  %1023 = vmatprep.mubr.msk.f32.mxu0 %vm1923_vm1, %v1159_v1  ;;  %1048 = vmatprep.mubr.msk.f32.mxu1 %vm1923_vm1, %v1159_v1  ;;  %v1312_v39 = vsel %vm286_vm0, %v19_v28, 0 }
   0x3   :  { %v27_v6 = vld [vmem:[%s1918_s0] sm:$0xff]  ;;  %v1208_v7 = vsel %vm286_vm0, %v18_v3, 0 }
   0x4   :  { %v1211_v8 = vadd.s32 24, %v1196_v4  ;;  %v1214_v9 = vsub.s32 0, %v1196_v4  ;;  %v1217_v10 = vsub.s32 1, %v1196_v4  ;;  %v1220_v11 = vsub.s32 2, %v1196_v4 }
   0x5   :  { %v1223_v12 = vsub.s32 3, %v1196_v4  ;;  %v1226_v13 = vsub.s32 4, %v1196_v4  ;;  %v1229_v14 = vsub.s32 5, %v1196_v4  ;;  %v1232_v15 = vsub.s32 6, %v1196_v4 }
   0x6   :  { %v1235_v16 = vrot.slane %v27_v6, %v1214_v9  ;;  %v1238_v17 = vrot.slane %v29_v5, %v1214_v9  ;;  %v1241_v18 = vrot.slane %v27_v6, %v1217_v10  ;;  %v1244_v19 = vrot.slane %v29_v5, %v1217_v10 }
   0x7   :  { %v1247_v20 = vrot.slane %v27_v6, %v1220_v11  ;;  %v1250_v21 = vrot.slane %v29_v5, %v1220_v11  ;;  %v1253_v22 = vrot.slane %v27_v6, %v1223_v12  ;;  %v1256_v23 = vrot.slane %v29_v5, %v1223_v12 }
   0x8   :  { %vm37_vm2 = vcmp.eq.s32.totalorder %v1211_v8, %v1235_v16  ;;  %vm69_vm3 = vcmp.eq.s32.totalorder %v1211_v8, %v1241_v18  ;;  %v1263_v24 = vrot.slane %v27_v6, %v1226_v13  ;;  %v1266_v25 = vrot.slane %v29_v5, %v1226_v13 }
   0x9   :  { %v57_v26 = vsel %vm37_vm2, %v1238_v17, 0.0  ;;  %v89_v27 = vsel %vm69_vm3, %v1244_v19, 0.0  ;;  %vm101_vm4 = vcmp.eq.s32.totalorder %v1211_v8, %v1247_v20  ;;  %vm133_vm5 = vcmp.eq.s32.totalorder %v1211_v8, %v1253_v22 }
   0xa   :  { %v93_v29 = vadd.f32 %v89_v27, %v57_v26  ;;  %v121_v30 = vsel %vm101_vm4, %v1250_v21, 0.0  ;;  %vm165_vm6 = vcmp.eq.s32.totalorder %v1211_v8, %v1263_v24  ;;  %v1290_v31 = vand.u32 4294901760, %v1208_v7 }
   0xb   :  { %v153_v32 = vsel %vm133_vm5, %v1256_v23, 0.0  ;;  %v1297_v33 = vrot.slane %v27_v6, %v1229_v14  ;;  %v1300_v34 = vrot.slane %v29_v5, %v1229_v14  ;;  %v1303_v35 = vrot.slane %v27_v6, %v1232_v15 }
   0xc   :  { %v125_v36 = vadd.f32 %v121_v30, %v93_v29  ;;  %v1306_v37 = vsub.s32 7, %v1196_v4  ;;  %v1309_v38 = vadd.s32 16, %v1196_v4  ;;  %v185_v40 = vsel %vm165_vm6, %v1266_v25, 0.0 }
   0xd   :  { %vm197_vm7 = vcmp.eq.s32.totalorder %v1211_v8, %v1297_v33  ;;  %vm1927_vm8 = vcmp.eq.s32.totalorder %v1211_v8, %v1303_v35  ;;  %v1323_v41 = vrot.slane %v29_v5, %v1232_v15  ;;  %v1333_v45 = vadd.s32 8, %v1196_v4 }
   0xe   :  { %v157_v42 = vadd.f32 %v153_v32, %v125_v36  ;;  %v217_v43 = vsel %vm197_vm7, %v1300_v34, 0.0  ;;  %v1330_v44 = vrot.slane %v27_v6, %v1306_v37  ;;  %v1336_v46 = vrot.slane %v29_v5, %v1306_v37 }
   0xf   :  { %vm36_vm9 = vcmp.eq.s32.totalorder %v1309_v38, %v1235_v16  ;;  %vm68_vm10 = vcmp.eq.s32.totalorder %v1309_v38, %v1241_v18  ;;  %vm1930_vm11 = vcmp.eq.s32.totalorder %v1309_v38, %v1247_v20  ;;  %v249_v50 = vsel %vm1927_vm8, %v1323_v41, 0.0 }
  0x10   :  { %v189_v47 = vadd.f32 %v185_v40, %v157_v42  ;;  %vm1926_vm12 = vcmp.eq.s32.totalorder %v1211_v8, %v1330_v44  ;;  %v56_v48 = vsel %vm36_vm9, %v1238_v17, 0.0  ;;  %v88_v49 = vsel %vm68_vm10, %v1244_v19, 0.0 }
  0x11   :  { %v92_v51 = vadd.f32 %v88_v49, %v56_v48  ;;  %v120_v52 = vsel %vm1930_vm11, %v1250_v21, 0.0  ;;  %vm1925_vm13 = vcmp.eq.s32.totalorder %v1309_v38, %v1253_v22  ;;  %vm1928_vm14 = vcmp.eq.s32.totalorder %v1309_v38, %v1263_v24 }
  0x12   :  { %v221_v53 = vadd.f32 %v217_v43, %v189_v47  ;;  %v152_v54 = vsel %vm1925_vm13, %v1256_v23, 0.0  ;;  %vm1929_vm15 = vcmp.eq.s32.totalorder %v1309_v38, %v1297_v33  ;;  %v281_v55 = vsel %vm1926_vm12, %v1336_v46, 0.0 }
  0x13   :  { %v124_v56 = vadd.f32 %v120_v52, %v92_v51  ;;  %v184_v57 = vsel %vm1928_vm14, %v1266_v25, 0.0  ;;  %vm1937_vm1 = vcmp.eq.s32.totalorder %v1196_v4, %v1235_v16  ;;  %v216_v59 = vsel %vm1929_vm15, %v1300_v34, 0.0 }
  0x14   :  { %v253_v58 = vadd.f32 %v249_v50, %v221_v53  ;;  %vm1932_vm13 = vcmp.eq.s32.totalorder %v1309_v38, %v1303_v35  ;;  %vm35_vm12 = vcmp.eq.s32.totalorder %v1333_v45, %v1235_v16  ;;  %vm1938_vm8 = vcmp.eq.s32.totalorder %v1309_v38, %v1330_v44 }
  0x15   :  { %v156_v60 = vadd.f32 %v152_v54, %v124_v56  ;;  %v55_v61 = vsel %vm35_vm12, %v1238_v17, 0.0  ;;  %vm1931_vm14 = vcmp.eq.s32.totalorder %v1333_v45, %v1241_v18  ;;  %vm1933_vm15 = vcmp.eq.s32.totalorder %v1333_v45, %v1247_v20 }
  0x16   :  { %v1398_v62 = vadd.f32 %v281_v55, %v253_v58  ;;  %v87_v63 = vsel %vm1931_vm14, %v1244_v19, 0.0  ;;  %vm1934_vm11 = vcmp.eq.s32.totalorder %v1333_v45, %v1253_v22  ;;  %v248_v3 = vsel %vm1932_vm13, %v1323_v41, 0.0 }
  0x17   :  { %v188_v0 = vadd.f32 %v184_v57, %v156_v60  ;;  %v91_v5 = vadd.f32 %v87_v63, %v55_v61  ;;  %v119_v6 = vsel %vm1933_vm15, %v1250_v21, 0.0  ;;  %v151_v27 = vsel %vm1934_vm11, %v1256_v23, 0.0 }
  0x18   :  { %v1417_v26 = vand.u32 4294901760, %v1398_v62  ;;  %vm1935_vm14 = vcmp.eq.s32.totalorder %v1333_v45, %v1263_v24  ;;  %vm1936_vm13 = vcmp.eq.s32.totalorder %v1333_v45, %v1297_v33  ;;  %v280_v29 = vsel %vm1938_vm8, %v1336_v46, 0.0 }
  0x19   :  { %v220_v28 = vadd.f32 %v216_v59, %v188_v0  ;;  %v123_v30 = vadd.f32 %v119_v6, %v91_v5  ;;  %vm227_vm15 = vcmp.eq.s32.totalorder %v1333_v45, %v1303_v35  ;;  %v183_v32 = vsel %vm1935_vm14, %v1266_v25, 0.0  ;;  %v20_v6 = vld [vmem:[%s1920_s2 + $0x10] sm:$0x3] }
  0x1a   :  { %1008 = vmatpush3.msra.mxu0 %v1417_v26  ;;  %v215_v36 = vsel %vm1936_vm13, %v1300_v34, 0.0  ;;  %v54_v40 = vsel %vm1937_vm1, %v1238_v17, 0.0  ;;  %vm1939_vm11 = vcmp.eq.s32.totalorder %v1196_v4, %v1241_v18  ;;  %vm259_vm14 = vcmp.eq.s32.totalorder %v1333_v45, %v1330_v44 }
  0x1b   :  { %1009 = vmatprep.subr.mxu0 %v1159_v1  ;;  %v252_v42 = vadd.f32 %v248_v3, %v220_v28  ;;  %v155_v43 = vadd.f32 %v151_v27, %v123_v30  ;;  %v86_v47 = vsel %vm1939_vm11, %v1244_v19, 0.0  ;;  %vm98_vm13 = vcmp.eq.s32.totalorder %v1196_v4, %v1247_v20 }
  0x1c   :  { %v90_v48 = vadd.f32 %v86_v47, %v54_v40  ;;  %vm1940_vm1 = vcmp.eq.s32.totalorder %v1196_v4, %v1253_v22  ;;  %vm1941_vm8 = vcmp.eq.s32.totalorder %v1196_v4, %v1263_v24  ;;  %v118_v50 = vsel %vm98_vm13, %v1250_v21, 0.0 }
  0x1d   :  { %v1461_v17 = vadd.f32 %v280_v29, %v252_v42  ;;  %v187_v49 = vadd.f32 %v183_v32, %v155_v43  ;;  %v150_v19 = vsel %vm1940_vm1, %v1256_v23, 0.0  ;;  %v247_v51 = vsel %vm227_vm15, %v1323_v41, 0.0 }
  0x1e   :  { %v279_v52 = vsel %vm259_vm14, %v1336_v46, 0.0  ;;  %v122_v53 = vadd.f32 %v118_v50, %v90_v48  ;;  %vm194_vm11 = vcmp.eq.s32.totalorder %v1196_v4, %v1297_v33  ;;  %v182_v23 = vsel %vm1941_vm8, %v1266_v25, 0.0 }
  0x1f   :  { %v1482_v21 = vand.u32 4294901760, %v1461_v17  ;;  %v219_v54 = vadd.f32 %v215_v36, %v187_v49  ;;  %vm226_vm1 = vcmp.eq.s32.totalorder %v1196_v4, %v1303_v35  ;;  %v214_v56 = vsel %vm194_vm11, %v1300_v34, 0.0 }
  0x20   :  { %v154_v55 = vadd.f32 %v150_v19, %v122_v53  ;;  %v1496_v57 = vrot.slane %v1190_v2, %v1214_v9  ;;  %v1500_v58 = vrot.slane %v1190_v2, %v1217_v10  ;;  %vm258_vm8 = vcmp.eq.s32.totalorder %v1196_v4, %v1330_v44 }
  0x21   :  { %1010 = vmatpush3.msra.mxu0 %v1482_v21  ;;  %v251_v25 = vadd.f32 %v247_v51, %v219_v54  ;;  %v1507_v59 = vrot.slane %v1190_v2, %v1220_v11  ;;  %v1511_v34 = vrot.slane %v1190_v2, %v1223_v12  ;;  %v1524_v11 = vrot.slane %v1190_v2, %v1226_v13 }
  0x22   :  { %1011 = vmatprep.subr.mxu0 %v1159_v1  ;;  %v186_v9 = vadd.f32 %v182_v23, %v154_v55  ;;  %v45_v10 = vsel %vm37_vm2, %v1496_v57, 0.0  ;;  %v77_v60 = vsel %vm69_vm3, %v1500_v58, 0.0  ;;  %v246_v12 = vsel %vm226_vm1, %v1323_v41, 0.0 }
  0x23   :  { %v283_v61 = vadd.f32 %v279_v52, %v251_v25  ;;  %v81_v63 = vadd.f32 %v77_v60, %v45_v10  ;;  %v109_v0 = vsel %vm101_vm4, %v1507_v59, 0.0  ;;  %v278_v5 = vsel %vm258_vm8, %v1336_v46, 0.0 }
  0x24   :  { %v218_v3 = vadd.f32 %v214_v56, %v186_v9  ;;  %v141_v13 = vsel %vm133_vm5, %v1511_v34, 0.0  ;;  %v1544_v41 = vrot.slane %v1190_v2, %v1229_v14  ;;  %v1553_v29 = vrot.slane %v1190_v2, %v1232_v15 }
  0x25   :  { %v1549_v27 = vand.u32 4294901760, %v283_v61  ;;  %v113_v28 = vadd.f32 %v109_v0, %v81_v63  ;;  %v1557_v46 = vsub.f32 %v1398_v62, %v1417_v26  ;;  %v173_v14 = vsel %vm165_vm6, %v1524_v11, 0.0 }
  0x26   :  { %v250_v30 = vadd.f32 %v246_v12, %v218_v3  ;;  %v1565_v32 = vrot.slane %v1190_v2, %v1306_v37  ;;  %v44_v15 = vsel %vm36_vm9, %v1496_v57, 0.0  ;;  %v76_v40 = vsel %vm68_vm10, %v1500_v58, 0.0 }
  0x27   :  { %1012 = vmatpush3.msra.mxu0 %v1549_v27  ;;  %v145_v36 = vadd.f32 %v141_v13, %v113_v28  ;;  %v418_v62 = vand.u32 4294901760, %v1557_v46  ;;  %v1578_v42 = vsel %vm286_vm0, %v20_v6, 0  ;;  %v205_v37 = vsel %vm197_vm7, %v1544_v41, 0.0 }
  0x28   :  { %1013 = vmatprep.subr.mxu0 %v1159_v1  ;;  %v282_v2 = vadd.f32 %v278_v5, %v250_v30  ;;  %v80_v43 = vadd.f32 %v76_v40, %v44_v15  ;;  %vm1942_vm2 = vcmp.eq.s32.totalorder %v1309_v38, %v1247_v20  ;;  %vm1943_vm0 = vcmp.eq.s32.totalorder %v1211_v8, %v1303_v35 }
  0x29   :  { %v108_v47 = vsel %vm1942_vm2, %v1507_v59, 0.0  ;;  %v177_v48 = vadd.f32 %v173_v14, %v145_v36  ;;  %v237_v49 = vsel %vm1943_vm0, %v1553_v29, 0.0  ;;  %v419_v50 = vsub.f32 %v1557_v46, %v418_v62 }
  0x2a   :  { %vm1944_vm3 = vcmp.eq.s32.totalorder %v1309_v38, %v1253_v22  ;;  %v1600_v51 = vand.u32 4294901760, %v282_v2  ;;  %vm1945_vm4 = vcmp.eq.s32.totalorder %v1211_v8, %v1330_v44  ;;  %v112_v53 = vadd.f32 %v108_v47, %v80_v43 }
  0x2b   :  { %v140_v19 = vsel %vm1944_vm3, %v1511_v34, 0.0  ;;  %v269_v52 = vsel %vm1945_vm4, %v1565_v32, 0.0  ;;  %vm1946_vm5 = vcmp.eq.s32.totalorder %v1309_v38, %v1263_v24  ;;  %v209_v23 = vadd.f32 %v205_v37, %v177_v48 }
  0x2c   :  { %v172_v54 = vsel %vm1946_vm5, %v1524_v11, 0.0  ;;  %v420_v55 = vand.u32 4294901760, %v419_v50  ;;  %v1612_v56 = vsub.f32 %v1461_v17, %v1482_v21  ;;  %v43_v25 = vsel %vm35_vm12, %v1496_v57, 0.0  ;;  %1014 = vmatpush3.msra.mxu0 %v1600_v51 }
  0x2d   :  { %v144_v8 = vadd.f32 %v140_v19, %v112_v53  ;;  %vm1947_vm6 = vcmp.eq.s32.totalorder %v1309_v38, %v1297_v33  ;;  %vm1948_vm7 = vcmp.eq.s32.totalorder %v1333_v45, %v1241_v18  ;;  %vm1949_vm9 = vcmp.eq.s32.totalorder %v1333_v45, %v1247_v20  ;;  %1015 = vmatprep.subr.mxu0 %v1159_v1 }
  0x2e   :  { %v204_v9 = vsel %vm1947_vm6, %v1544_v41, 0.0  ;;  %v75_v10 = vsel %vm1948_vm7, %v1500_v58, 0.0  ;;  %v107_v17 = vsel %vm1949_vm9, %v1507_v59, 0.0  ;;  %v241_v60 = vadd.f32 %v237_v49, %v209_v23  ;;  %1033 = vmatpush3.msra.mxu1 %v420_v55 }
  0x2f   :  { %vm1950_vm10 = vcmp.eq.s32.totalorder %v1309_v38, %v1303_v35  ;;  %v425_v63 = vand.u32 4294901760, %v1612_v56  ;;  %v79_v0 = vadd.f32 %v75_v10, %v43_v25  ;;  %1034 = vmatprep.subr.mxu1 %v1159_v1  ;;  %v176_v3 = vadd.f32 %v172_v54, %v144_v8 }
  0x30   :  { %v236_v12 = vsel %vm1950_vm10, %v1553_v29, 0.0  ;;  %vm1951_vm12 = vcmp.eq.s32.totalorder %v1309_v38, %v1330_v44  ;;  %vm1952_vm2 = vcmp.eq.s32.totalorder %v1333_v45, %v1253_v22  ;;  %vm1953_vm0 = vcmp.eq.s32.totalorder %v1333_v45, %v1263_v24 }
  0x31   :  { %v268_v5 = vsel %vm1951_vm12, %v1565_v32, 0.0  ;;  %v139_v13 = vsel %vm1952_vm2, %v1511_v34, 0.0  ;;  %v171_v6 = vsel %vm1953_vm0, %v1524_v11, 0.0  ;;  %v273_v28 = vadd.f32 %v269_v52, %v241_v60 }
  0x32   :  { %v426_v30 = vsub.f32 %v1612_v56, %v425_v63  ;;  %v111_v14 = vadd.f32 %v107_v17, %v79_v0  ;;  %v1654_v15 = vsub.f32 %v283_v61, %v1549_v27  ;;  %v208_v38 = vadd.f32 %v204_v9, %v176_v3 }
  0x33   :  { %vm1954_vm3 = vcmp.eq.s32.totalorder %v1196_v4, %v1235_v16  ;;  %vm1955_vm4 = vcmp.eq.s32.totalorder %v1196_v4, %v1241_v18  ;;  %v106_v37 = vsel %vm98_vm13, %v1507_v59, 0.0  ;;  %v1668_v43 = vand.u32 4294901760, %v273_v28 }
  0x34   :  { %v42_v36 = vsel %vm1954_vm3, %v1496_v57, 0.0  ;;  %v74_v40 = vsel %vm1955_vm4, %v1500_v58, 0.0  ;;  %v427_v61 = vand.u32 4294901760, %v426_v30  ;;  %v143_v47 = vadd.f32 %v139_v13, %v111_v14 }
  0x35   :  { %v432_v48 = vand.u32 4294901760, %v1654_v15  ;;  %v240_v49 = vadd.f32 %v236_v12, %v208_v38  ;;  %vm1956_vm5 = vcmp.eq.s32.totalorder %v1333_v45, %v1297_v33  ;;  %v235_v18 = vsel %vm227_vm15, %v1553_v29, 0.0  ;;  %1016 = vmatpush3.msra.mxu0 %v1668_v43 }
  0x36   :  { %v203_v16 = vsel %vm1956_vm5, %v1544_v41, 0.0  ;;  %v78_v57 = vadd.f32 %v74_v40, %v42_v36  ;;  %1035 = vmatpush3.msra.mxu1 %v427_v61  ;;  %v175_v20 = vadd.f32 %v171_v6, %v143_v47  ;;  %v267_v58 = vsel %vm259_vm14, %v1565_v32, 0.0  ;;  %1017 = vmatprep.subr.mxu0 %v1159_v1 }
  0x37   :  { %v433_v59 = vsub.f32 %v1654_v15, %v432_v48  ;;  %vm1957_vm13 = vcmp.eq.s32.totalorder %v1196_v4, %v1253_v22  ;;  %v272_v19 = vadd.f32 %v268_v5, %v240_v49  ;;  %1036 = vmatprep.subr.mxu1 %v1159_v1  ;;  %vm1958_vm15 = vcmp.eq.s32.totalorder %v1196_v4, %v1263_v24 }
  0x38   :  { %v138_v50 = vsel %vm1957_vm13, %v1511_v34, 0.0  ;;  %v110_v52 = vadd.f32 %v106_v37, %v78_v57  ;;  %v170_v45 = vsel %vm1958_vm15, %v1524_v11, 0.0  ;;  %v1698_v53 = vsub.f32 %v282_v2, %v1600_v51 }
  0x39   :  { %v207_v54 = vadd.f32 %v203_v16, %v175_v20  ;;  %v434_v23 = vand.u32 4294901760, %v433_v59  ;;  %v1702_v22 = vsub.f32 %v1208_v7, %v1290_v31  ;;  %v1705_v34 = vsub.f32 %v273_v28, %v1668_v43 }
  0x3a   :  { %v1707_v55 = vand.u32 4294901760, %v272_v19  ;;  %v142_v25 = vadd.f32 %v138_v50, %v110_v52  ;;  %v439_v8 = vand.u32 4294901760, %v1698_v53  ;;  %v1711_v24 = vand.u32 4294901760, %v1312_v39 }
  0x3b   :  { %v239_v11 = vadd.f32 %v235_v18, %v207_v54  ;;  %1037 = vmatpush3.msra.mxu1 %v434_v23  ;;  %v202_v2 = vsel %vm194_vm11, %v1544_v41, 0.0  ;;  %v371_v7 = vand.u32 4294901760, %v1702_v22  ;;  %v446_v9 = vand.u32 4294901760, %v1705_v34 }
  0x3c   :  { %1018 = vmatpush3.msra.mxu0 %v1707_v55  ;;  %1038 = vmatprep.subr.mxu1 %v1159_v1  ;;  %v174_v10 = vadd.f32 %v170_v45, %v142_v25  ;;  %v234_v17 = vsel %vm226_vm1, %v1553_v29, 0.0  ;;  %v440_v60 = vsub.f32 %v1698_v53, %v439_v8  ;;  %v1729_v33 = vsub.f32 %v272_v19, %v1707_v55 }
  0x3d   :  { %1019 = vmatprep.subr.mxu0 %v1159_v1  ;;  %v271_v41 = vadd.f32 %v267_v58, %v239_v11  ;;  %v266_v12 = vsel %vm258_vm8, %v1565_v32, 0.0  ;;  %v447_v35 = vsub.f32 %v1705_v34, %v446_v9  ;;  %v1741_v29 = vsub.f32 %v1312_v39, %v1711_v24 }
  0x3e   :  { %v206_v0 = vadd.f32 %v202_v2, %v174_v10  ;;  %v441_v3 = vand.u32 4294901760, %v440_v60  ;;  %v453_v5 = vand.u32 4294901760, %v1729_v33  ;;  %v1745_v13 = vand.u32 4294901760, %v1578_v42 }
  0x3f   :  { %v1747_v6 = vand.u32 4294901760, %v271_v41  ;;  %v372_v4 = vsub.f32 %v1702_v22, %v371_v7  ;;  %v448_v44 = vand.u32 4294901760, %v447_v35  ;;  %v381_v32 = vand.u32 4294901760, %v1741_v29 }
  0x40   :  { %v238_v28 = vadd.f32 %v234_v17, %v206_v0  ;;  %1039 = vmatpush3.msra.mxu1 %v441_v3  ;;  %v454_v39 = vsub.f32 %v1729_v33, %v453_v5  ;;  %v1769_v61 = vsub.f32 %v1578_v42, %v1745_v13  ;;  %vm1959_vm1 = vmmov 0  }
  0x41   :  { %1020 = vmatpush3.msra.mxu0 %v1747_v6  ;;  %1040 = vmatprep.subr.mxu1 %v1159_v1  ;;  %v1759_v30 = vsub.f32 %v271_v41, %v1747_v6  ;;  %v373_v36 = vand.u32 4294901760, %v372_v4  ;;  %v382_v37 = vsub.f32 %v1741_v29, %v381_v32 }
  0x42   :  { %1021 = vmatprep.subr.mxu0 %v1159_v1  ;;  %v270_v14 = vadd.f32 %v266_v12, %v238_v28  ;;  %1041 = vmatpush3.msra.mxu1 %v448_v44  ;;  %v455_v38 = vand.u32 4294901760, %v454_v39  ;;  %v391_v57 = vand.u32 4294901760, %v1769_v61 }
  0x43   :  { %1042 = vmatprep.subr.mxu1 %v1159_v1  ;;  %v460_v40 = vand.u32 4294901760, %v1759_v30  ;;  %v383_v42 = vand.u32 4294901760, %v382_v37 }
  0x44   :  { %v1771_v47 = vand.u32 4294901760, %v270_v14  ;;  %1043 = vmatpush3.msra.mxu1 %v455_v38  ;;  %v392_v59 = vsub.f32 %v1769_v61, %v391_v57 }
  0x45   :  { %1044 = vmatprep.subr.mxu1 %v1159_v1  ;;  %v461_v49 = vsub.f32 %v1759_v30, %v460_v40 }
  0x46   :  { %1022 = vmatpush3.msra.mxu0 %v1771_v47  ;;  %v1779_v16 = vsub.f32 %v270_v14, %v1771_v47  ;;  %v393_v19 = vand.u32 4294901760, %v392_v59 }
  0x47   :  { %1057 = vmatprep.subr.mxu0 %v1159_v1  ;;  %1024 = vmatmul.mubr.f32.vlgmr.msra.gmra.mxu0 %v373_v36  ;;  %v462_v18 = vand.u32 4294901760, %v461_v49 }
  0x48   :  { %1058 = vmatpush3.msra.mxu0 %v1557_v46  ;;  %1026 = vmatprep.mubr.msk.f32.mxu0 %vm1959_vm1, %v1159_v1  ;;  %v467_v20 = vand.u32 4294901760, %v1779_v16 }
  0x49   :  { %1059 = vmatprep.subr.mxu0 %v1159_v1  ;;  %1045 = vmatpush3.msra.mxu1 %v462_v18 }
  0x4a   :  { %1060 = vmatpush3.msra.mxu0 %v1612_v56  ;;  %1046 = vmatprep.subr.mxu1 %v1159_v1  ;;  %v468_v58 = vsub.f32 %v1779_v16, %v467_v20 }
  0x4b   :  { %1061 = vmatprep.subr.mxu0 %v1159_v1  ;;  %1027 = vmatmul.mubr.f32.gmra.mxu0 %v383_v42 }
  0x4c   :  { %1062 = vmatpush3.msra.mxu0 %v1654_v15  ;;  %v469_v50 = vand.u32 4294901760, %v468_v58  ;;  %1029 = vmatprep.mubr.msk.f32.mxu0 %vm1959_vm1, %v1159_v1 }
  0x4d   :  { %1063 = vmatprep.subr.mxu0 %v1159_v1 }
  0x4e   :  { %1047 = vmatpush3.msra.mxu1 %v469_v50  ;;  %1064 = vmatpush3.msra.mxu0 %v1698_v53 }
  0x4f   :  { %1049 = vmatmul.mubr.f32.vlgmr.msra.gmra.mxu1 %v1290_v31  ;;  %1065 = vmatprep.subr.mxu0 %v1159_v1 }
  0x50   :  { %1082 = vmatprep.subr.mxu1 %v1159_v1  ;;  %1066 = vmatpush3.msra.mxu0 %v1705_v34 }
  0x51   :  { %1083 = vmatpush3.msra.mxu1 %v1417_v26  ;;  %1067 = vmatprep.subr.mxu0 %v1159_v1 }
  0x52   :  { %1084 = vmatprep.subr.mxu1 %v1159_v1  ;;  %1068 = vmatpush3.msra.mxu0 %v1729_v33 }
  0x53   :  { %1085 = vmatpush3.msra.mxu1 %v1482_v21  ;;  %1030 = vmatmul.mubr.f32.gmra.mxu0 %v393_v19  ;;  %v934_v19 = vstv %s1921_s3 }
  0x54   :  { %1069 = vmatprep.subr.mxu0 %v1159_v1  ;;  %1086 = vmatprep.subr.mxu1 %v1159_v1 }
  0x55   :  { %1070 = vmatpush3.msra.mxu0 %v1759_v30  ;;  %1087 = vmatpush3.msra.mxu1 %v1549_v27 }
  0x56   :  { %1051 = vmatprep.mubr.msk.f32.mxu1 %vm1959_vm1, %v1159_v1  ;;  %1071 = vmatprep.subr.mxu0 %v1159_v1 }
  0x57   :  { %1088 = vmatprep.subr.mxu1 %v1159_v1  ;;  %1052 = vmatmul.mubr.f32.gmra.mxu1 %v1711_v24 }
  0x58   :  { %1072 = vmatpush3.msra.mxu0 %v1779_v16  ;;  %1073 = vmatprep.mubr.msk.f32.mxu0 %vm1959_vm1, %v1159_v1 }
  0x59   :  { %1089 = vmatpush3.msra.mxu1 %v1600_v51  ;;  %1074 = vmatmul.mubr.f32.vlgmr.msra.gmra.mxu0 %v1702_v22 }
  0x5a   :  { %1090 = vmatprep.subr.mxu1 %v1159_v1  ;;  %1107 = vmatprep.subr.mxu0 %v1159_v1 }
  0x5b   :  { %1091 = vmatpush3.msra.mxu1 %v1668_v43  ;;  %1108 = vmatpush3.msra.mxu0 %v418_v62 }
  0x5c   :  { %1054 = vmatprep.mubr.msk.f32.mxu1 %vm1959_vm1, %v1159_v1  ;;  %1092 = vmatprep.subr.mxu1 %v1159_v1 }
  0x5d   :  { %1109 = vmatprep.subr.mxu0 %v1159_v1  ;;  %1055 = vmatmul.mubr.f32.gmra.mxu1 %v1745_v13 }
  0x5e   :  { %1076 = vmatprep.mubr.msk.f32.mxu0 %vm1959_vm1, %v1159_v1  ;;  %1093 = vmatpush3.msra.mxu1 %v1707_v55 }
  0x5f   :  { %1110 = vmatpush3.msra.mxu0 %v425_v63  ;;  %1094 = vmatprep.subr.mxu1 %v1159_v1 }
  0x60   :  { %1077 = vmatmul.mubr.f32.gmra.mxu0 %v1741_v29  ;;  %1111 = vmatprep.subr.mxu0 %v1159_v1 }
  0x61   :  { %1095 = vmatpush3.msra.mxu1 %v1747_v6  ;;  %1112 = vmatpush3.msra.mxu0 %v432_v48 }
  0x62   :  { %1096 = vmatprep.subr.mxu1 %v1159_v1  ;;  %1113 = vmatprep.subr.mxu0 %v1159_v1 }
  0x63   :  { %1079 = vmatprep.mubr.msk.f32.mxu0 %vm1959_vm1, %v1159_v1  ;;  %1097 = vmatpush3.msra.mxu1 %v1771_v47 }
  0x64   :  { %1098 = vmatprep.mubr.msk.f32.mxu1 %vm1959_vm1, %v1159_v1  ;;  %1114 = vmatpush3.msra.mxu0 %v439_v8 }
  0x65   :  { %1080 = vmatmul.mubr.f32.gmra.mxu0 %v1769_v61  ;;  %1099 = vmatmul.mubr.f32.vlgmr.msra.gmra.mxu1 %v371_v7 }
  0x66   :  { %1115 = vmatprep.subr.mxu0 %v1159_v1  ;;  %1132 = vmatprep.subr.mxu1 %v1159_v1 }
  0x67   :  { %1116 = vmatpush3.msra.mxu0 %v446_v9  ;;  %1133 = vmatpush3.msra.mxu1 %v1417_v26 }
  0x68   :  { %1117 = vmatprep.subr.mxu0 %v1159_v1  ;;  %1134 = vmatprep.subr.mxu1 %v1159_v1 }
  0x69   :  { %1101 = vmatprep.mubr.msk.f32.mxu1 %vm1959_vm1, %v1159_v1  ;;  %1118 = vmatpush3.msra.mxu0 %v453_v5 }
  0x6a   :  { %1135 = vmatpush3.msra.mxu1 %v1482_v21  ;;  %1119 = vmatprep.subr.mxu0 %v1159_v1 }
  0x6b   :  { %1102 = vmatmul.mubr.f32.gmra.mxu1 %v381_v32  ;;  %1136 = vmatprep.subr.mxu1 %v1159_v1 }
  0x6c   :  { %1120 = vmatpush3.msra.mxu0 %v460_v40  ;;  %1137 = vmatpush3.msra.mxu1 %v1549_v27 }
  0x6d   :  { %1121 = vmatprep.subr.mxu0 %v1159_v1  ;;  %1138 = vmatprep.subr.mxu1 %v1159_v1 }
  0x6e   :  { %1104 = vmatprep.mubr.msk.f32.mxu1 %vm1959_vm1, %v1159_v1  ;;  %1122 = vmatpush3.msra.mxu0 %v467_v20 }
  0x6f   :  { %1123 = vmatprep.mubr.msk.f32.mxu0 %vm1959_vm1, %v1159_v1  ;;  %1139 = vmatpush3.msra.mxu1 %v1600_v51 }
  0x70   :  { %1105 = vmatmul.mubr.f32.gmra.mxu1 %v391_v57  ;;  %1124 = vmatmul.mubr.f32.vlgmr.msra.gmra.mxu0 %v1290_v31 }
  0x71   :  { %1140 = vmatprep.subr.mxu1 %v1159_v1  ;;  %1126 = vmatprep.mubr.msk.f32.mxu0 %vm1959_vm1, %v1159_v1 }
  0x72   :  { %1141 = vmatpush3.msra.mxu1 %v1668_v43  ;;  %1148 = vmatprep.mubr.msk.f32.mxu1 %vm1959_vm1, %v1159_v1 }
  0x73   :  { %1142 = vmatprep.subr.mxu1 %v1159_v1 }
  0x74   :  { %1143 = vmatpush3.msra.mxu1 %v1707_v55  ;;  %1127 = vmatmul.mubr.f32.gmra.mxu0 %v1711_v24 }
  0x75   :  { %1144 = vmatprep.subr.mxu1 %v1159_v1  ;;  %1129 = vmatprep.mubr.msk.f32.mxu0 %vm1959_vm1, %v1159_v1 }
  0x76   :  { %1145 = vmatpush3.msra.mxu1 %v1747_v6 }
  0x77   :  { %1146 = vmatprep.subr.mxu1 %v1159_v1 }
  0x78   :  { %1147 = vmatpush3.msra.mxu1 %v1771_v47  ;;  %1130 = vmatmul.mubr.f32.gmra.mxu0 %v1745_v13 }
  0x79   :  { %1149 = vmatmul.mubr.f32.vlgmr.msra.gmra.mxu1 %v1290_v31 }
  0x7a   :  { %1151 = vmatprep.mubr.msk.f32.mxu1 %vm1959_vm1, %v1159_v1 }
  0x7d   :  { %1152 = vmatmul.mubr.f32.gmra.mxu1 %v1711_v24 }
  0x7e   :  { %1154 = vmatprep.mubr.msk.f32.mxu1 %vm1959_vm1, %v1159_v1 }
  0x81   :  { %1155 = vmatmul.mubr.f32.gmra.mxu1 %v1745_v13 }
 0x107   :  { %v375_v26 = vpop.f32.mrf.mxu0 }
 0x109   :  { %v1025_v21 = vpop.f32.mrf.mxu0 }
 0x10b   :  { %v385_v27 = vpop.f32.mrf.mxu0 }
 0x10d   :  { %v1028_v46 = vpop.f32.mrf.mxu0 }
 0x10f   :  { %v506_v62 = vpop.f32.mrf.mxu1 }
 0x110   :  { %v507_v7 = vadd.f32 %v506_v62, %v375_v26 }
 0x111   :  { %v1050_v51 = vpop.f32.mrf.mxu1 }
 0x113   :  { %v395_v56 = vpop.f32.mrf.mxu0 }
 0x115   :  { %v1031_v63 = vpop.f32.mrf.mxu0 }
 0x117   :  { %v512_v15 = vpop.f32.mrf.mxu1 }
 0x118   :  { %v513_v10 = vadd.f32 %v512_v15, %v385_v27 }
 0x119   :  { %v606_v31 = vpop.f32.mrf.mxu0  ;;  %v1053_v43 = vpop.f32.mrf.mxu1 }
 0x11a   :  { %v607_v17 = vadd.f32 %v606_v31, %v507_v7 }
 0x11b   :  { %v1075_v48 = vpop.f32.mrf.mxu0 }
 0x11d   :  { %v518_v52 = vpop.f32.mrf.mxu1 }
 0x11e   :  { %v519_v40 = vadd.f32 %v518_v52, %v395_v56 }
 0x11f   :  { %v1056_v45 = vpop.f32.mrf.mxu1 }
 0x120   :  { %v613_v53 = vpop.f32.mrf.mxu0 }
 0x121   :  { %v614_v33 = vadd.f32 %v613_v53, %v513_v10 }
 0x122   :  { %v1078_v54 = vpop.f32.mrf.mxu0 }
 0x125   :  { %v620_v23 = vpop.f32.mrf.mxu0  ;;  %v701_v1 = vpop.f32.mrf.mxu1 }
 0x126   :  { %v702_v41 = vadd.f32 %v701_v1, %v607_v17  ;;  %v621_v61 = vadd.f32 %v620_v23, %v519_v40 }
 0x127   :  { %v1100_v22 = vpop.f32.mrf.mxu1  ;;  %v1081_v34 = vpop.f32.mrf.mxu0 }
 0x12b   :  { %v709_v55 = vpop.f32.mrf.mxu1 }
 0x12c   :  { %v710_v29 = vadd.f32 %v709_v55, %v614_v33 }
 0x12d   :  { %v1103_v25 = vpop.f32.mrf.mxu1 }
 0x130   :  { %v717_v8 = vpop.f32.mrf.mxu1  ;;  %v812_v24 = vpop.f32.mrf.mxu0 }
 0x131   :  { %v813_v0 = vadd.f32 %v812_v24, %v702_v41  ;;  %v718_v49 = vadd.f32 %v717_v8, %v621_v61 }
 0x132   :  { %v1125_v11 = vpop.f32.mrf.mxu0  ;;  %v1106_v2 = vpop.f32.mrf.mxu1 }
 0x134   :  { %v818_v9 = vpop.f32.mrf.mxu0 }
 0x135   :  { %v819_v13 = vadd.f32 %v818_v9, %v710_v29 }
 0x136   :  { %v1128_v60 = vpop.f32.mrf.mxu0 }
 0x138   :  { %v824_v12 = vpop.f32.mrf.mxu0 }
 0x139   :  { %v903_v35 = vpop.f32.mrf.mxu1  ;;  %v825_v18 = vadd.f32 %v824_v12, %v718_v49 }
 0x13a   :  { %v1131_v3 = vpop.f32.mrf.mxu0  ;;  %v904_v6 = vadd.f32 %v903_v35, %v813_v0 }
 0x13b   :  { %v1150_v5 = vpop.f32.mrf.mxu1 }
 0x13c   :  { %v919_v28 = vmul.f32 %v904_v6, %v904_v6 }
 0x13d   :  { %v909_v4 = vpop.f32.mrf.mxu1 }
 0x13e   :  { %v910_v44 = vadd.f32 %v909_v4, %v819_v13 }
 0x13f   :  { %v1153_v32 = vpop.f32.mrf.mxu1 }
 0x140   :  { %v920_v39 = vmul.f32 %v910_v44, %v910_v44 }
 0x141   :  { %v915_v30 = vpop.f32.mrf.mxu1 }
 0x142   :  { %v921_v14 = vadd.f32 %v920_v39, %v919_v28  ;;  %v916_v57 = vadd.f32 %v915_v30, %v825_v18 }
 0x143   :  { %v1156_v38 = vpop.f32.mrf.mxu1 }
 0x144   :  { %v922_v36 = vrot.slane %v921_v14, 4 }
 0x146   :  { %v923_v37 = vadd.f32 %v922_v36, %v921_v14 }
 0x148   :  { %v924_v47 = vrot.slane %v923_v37, 2 }
 0x14a   :  { %v925_v16 = vadd.f32 %v924_v47, %v923_v37 }
 0x14c   :  { %v926_v42 = vrot.slane %v925_v16, 1 }
 0x14e   :  { %v927_v20 = vadd.f32 %v926_v42, %v925_v16 }
 0x150   :  { %v928_v58 = vsub.f32 %v927_v20, %v916_v57 }
 0x152   :  { %v929_v59 = vmul.f32 0.5, %v928_v58 }
 0x154   :  { %v931_v50 = vrot.slane %v929_v59, 1 }
 0x156   :  { %v933_v26 = vadd.f32 %v931_v50, %v916_v57 }
 0x158   :  { %v935_v21 = vadd.f32 %v934_v19, %v933_v26 }
 0x15a   :  { %936 = vst [vmem:[%s1922_s4] sm:$0x1] %v935_v21 }

</bundles_post_ra>
